<compile_context>
chip_gen: v7x
topology: tpu7x:2x2x1
jax: 0.10.0
libtpu: 0.0.40
codegen_flags: <defaults>
</compile_context>

<pallas_src>
import math

import numpy as np
import jax
import jax.numpy as jnp
from jax.experimental import pallas as pl
from jax.experimental.pallas import tpu as pltpu

_TARGET_BLOCK_BYTES = 4 * 1024 * 1024   # per input block streamed HBM -> VMEM
_VMEM_LIMIT_BYTES = 32 * 1024 * 1024    # fits blocks + f32 accumulators on all gens


# --------------------------------------------------------------------------
# Kernel 1: reduce over the (squeezed) leading axis and the lane (last) axis.
# Input  y : (P, C, L)   ->  per-channel outputs (C, 1), (C, 1)
# --------------------------------------------------------------------------
def _make_lane_minmax_kernel(n_p, n_l, tile_l, valid_last_l):
    last_p, last_l = n_p - 1, n_l - 1
    need_mask = valid_last_l < tile_l

    def kernel(x_ref, min_ref, max_ref, mn_acc, mx_acc):
        pi = pl.program_id(1)   # reduction over the leading ("pre") axis
        li = pl.program_id(2)   # reduction over lane-axis tiles

        @pl.when(jnp.logical_and(pi == 0, li == 0))
        def _init():
            mn_acc[...] = jnp.full(mn_acc.shape, jnp.inf, jnp.float32)
            mx_acc[...] = jnp.full(mx_acc.shape, -jnp.inf, jnp.float32)

        x = x_ref[0].astype(jnp.float32)          # (tile_c, tile_l)

        if need_mask:
            @pl.when(li < last_l)
            def _full_tile():
                mn_acc[...] = jnp.minimum(mn_acc[...], x)
                mx_acc[...] = jnp.maximum(mx_acc[...], x)

            @pl.when(li == last_l)
            def _tail_tile():
                col = jax.lax.broadcasted_iota(jnp.int32, x.shape, 1)
                ok = col < valid_last_l
                mn_acc[...] = jnp.minimum(mn_acc[...], jnp.where(ok, x, jnp.inf))
                mx_acc[...] = jnp.maximum(mx_acc[...], jnp.where(ok, x, -jnp.inf))
        else:
            mn_acc[...] = jnp.minimum(mn_acc[...], x)
            mx_acc[...] = jnp.maximum(mx_acc[...], x)

        # One-time epilogue: cross-lane reduce + narrow store.
        @pl.when(jnp.logical_and(pi == last_p, li == last_l))
        def _epilogue():
            min_ref[...] = jnp.min(mn_acc[...], axis=1, keepdims=True)
            max_ref[...] = jnp.max(mx_acc[...], axis=1, keepdims=True)

    return kernel


def _pallas_aminmax_lane(y, target_block_bytes=_TARGET_BLOCK_BYTES):
    """Per-channel min/max of y[P, C, L], reducing over P and L -> ((C,), (C,))."""
    P, C, L = y.shape
    itemsize = y.dtype.itemsize

    # Channel-row blocking: two blocks when cleanly possible so the leading
    # "parallel" grid axis lets v7x's two TensorCores split the sweep.
    if C >= 16 and C % 16 == 0:
        tile_c = C // 2
    else:
        tile_c = C
    n_c = C // tile_c

    # Lane tile: multiple of 128 sized for ~target_block_bytes per block, or
    # the full L when it already fits (then no tail masking is needed).
    budget = max(128, target_block_bytes // (itemsize * tile_c))
    if L <= budget:
        tile_l = L
    else:
        tile_l = (budget // 128) * 128
    n_l = pl.cdiv(L, tile_l)
    valid_last_l = L - (n_l - 1) * tile_l

    kernel = _make_lane_minmax_kernel(P, n_l, tile_l, valid_last_l)

    min_out, max_out = pl.pallas_call(
        kernel,
        out_shape=(jax.ShapeDtypeStruct((C, 1), jnp.float32),
                   jax.ShapeDtypeStruct((C, 1), jnp.float32)),
        grid_spec=pltpu.PrefetchScalarGridSpec(
            num_scalar_prefetch=0,
            grid=(n_c, P, n_l),
            in_specs=[pl.BlockSpec((1, tile_c, tile_l),
                                   lambda ci, pi, li: (pi, ci, li))],
            out_specs=(pl.BlockSpec((tile_c, 1), lambda ci, pi, li: (ci, 0)),
                       pl.BlockSpec((tile_c, 1), lambda ci, pi, li: (ci, 0))),
            scratch_shapes=[pltpu.VMEM((tile_c, tile_l), jnp.float32),
                            pltpu.VMEM((tile_c, tile_l), jnp.float32)]),
        compiler_params=pltpu.CompilerParams(
            dimension_semantics=("parallel", "arbitrary", "arbitrary"),
            vmem_limit_bytes=_VMEM_LIMIT_BYTES),
    )(y)
    return min_out[:, 0], max_out[:, 0]


# --------------------------------------------------------------------------
# Kernel 2: reduce over the sublane (row) axis (used when ch_axis is last).
# Input  y : (M, C)   ->  per-channel outputs (1, C), (1, C)
# --------------------------------------------------------------------------
def _make_sublane_minmax_kernel(n_r, tile_r, valid_last_r):
    last_r = n_r - 1
    need_mask = valid_last_r < tile_r

    def kernel(x_ref, min_ref, max_ref, mn_acc, mx_acc):
        ri = pl.program_id(0)

        @pl.when(ri == 0)
        def _init():
            mn_acc[...] = jnp.full(mn_acc.shape, jnp.inf, jnp.float32)
            mx_acc[...] = jnp.full(mx_acc.shape, -jnp.inf, jnp.float32)

        x = x_ref[...].astype(jnp.float32)        # (tile_r, C)

        if need_mask:
            @pl.when(ri < last_r)
            def _full_tile():
                mn_acc[...] = jnp.minimum(mn_acc[...], x)
                mx_acc[...] = jnp.maximum(mx_acc[...], x)

            @pl.when(ri == last_r)
            def _tail_tile():
                row = jax.lax.broadcasted_iota(jnp.int32, x.shape, 0)
                ok = row < valid_last_r
                mn_acc[...] = jnp.minimum(mn_acc[...], jnp.where(ok, x, jnp.inf))
                mx_acc[...] = jnp.maximum(mx_acc[...], jnp.where(ok, x, -jnp.inf))
        else:
            mn_acc[...] = jnp.minimum(mn_acc[...], x)
            mx_acc[...] = jnp.maximum(mx_acc[...], x)

        @pl.when(ri == last_r)
        def _epilogue():
            min_ref[...] = jnp.min(mn_acc[...], axis=0, keepdims=True)
            max_ref[...] = jnp.max(mx_acc[...], axis=0, keepdims=True)

    return kernel


def _pallas_aminmax_sublane(y, target_block_bytes=_TARGET_BLOCK_BYTES):
    """Per-column min/max of y[M, C], reducing over M -> ((C,), (C,))."""
    M, C = y.shape
    itemsize = y.dtype.itemsize

    budget = max(8, target_block_bytes // (itemsize * C))
    if M <= budget:
        tile_r = M
    else:
        tile_r = (budget // 8) * 8
    n_r = pl.cdiv(M, tile_r)
    valid_last_r = M - (n_r - 1) * tile_r

    kernel = _make_sublane_minmax_kernel(n_r, tile_r, valid_last_r)

    min_out, max_out = pl.pallas_call(
        kernel,
        out_shape=(jax.ShapeDtypeStruct((1, C), jnp.float32),
                   jax.ShapeDtypeStruct((1, C), jnp.float32)),
        grid_spec=pltpu.PrefetchScalarGridSpec(
            num_scalar_prefetch=0,
            grid=(n_r,),
            in_specs=[pl.BlockSpec((tile_r, C), lambda ri: (ri, 0))],
            out_specs=(pl.BlockSpec((1, C), lambda ri: (0, 0)),
                       pl.BlockSpec((1, C), lambda ri: (0, 0))),
            scratch_shapes=[pltpu.VMEM((tile_r, C), jnp.float32),
                            pltpu.VMEM((tile_r, C), jnp.float32)]),
        compiler_params=pltpu.CompilerParams(
            dimension_semantics=("arbitrary",),
            vmem_limit_bytes=_VMEM_LIMIT_BYTES),
    )(y)
    return min_out[0], max_out[0]


# --------------------------------------------------------------------------
# Dispatch (mirrors torch._aminmax / _transform_to_ch_axis without HBM copies)
# --------------------------------------------------------------------------
def _pick_global_rows(n):
    """Largest power-of-two row count (<=1024) dividing n while keeping >=128 cols."""
    rows, r = 1, 2
    while r <= 1024 and n % r == 0 and (n // r) >= 128:
        rows = r
        r *= 2
    return rows


def pallas_aminmax(x, ch_axis):
    shape = x.shape
    if ch_axis == -1:
        n = x.size
        rows = _pick_global_rows(n)
        y = x.reshape(1, rows, n // rows)          # free (contiguous) reshape
        mn, mx = _pallas_aminmax_lane(y)
        return jnp.min(mn), jnp.max(mx)            # tiny final cross-row reduce

    axis = ch_axis if ch_axis >= 0 else len(shape) + ch_axis
    C = shape[axis]
    pre = math.prod(shape[:axis])
    post = math.prod(shape[axis + 1:])
    if post == 1:
        # channel axis is (effectively) the last axis -> reduce over sublanes
        return _pallas_aminmax_sublane(x.reshape(pre, C))
    return _pallas_aminmax_lane(x.reshape(pre, C, post))


# --------------------------------------------------------------------------
# Observer classes (Python-side state; forward semantics match the spec)
# --------------------------------------------------------------------------
class ObserverBase:
    def __init__(self, bit=8, symmetric=False, ch_axis=-1):
        self.symmetric = symmetric
        self.ch_axis = ch_axis
        self.eps = jnp.float32(1e-8)
        self.set_bit(bit)
        self.min_val = jnp.array(float("inf"), jnp.float32)
        self.max_val = jnp.array(float("-inf"), jnp.float32)

    def set_bit(self, bit):
        self.bit = bit
        if self.symmetric:
            self.quant_min = -2 ** (self.bit - 1)
            self.quant_max = 2 ** (self.bit - 1) - 1
        else:
            self.quant_min = 0
            self.quant_max = 2 ** self.bit - 1

    def set_name(self, name):
        self.name = name

    def calculate_qparams(self, min_val, max_val):
        quant_min, quant_max = self.quant_min, self.quant_max
        min_val_neg = jnp.minimum(min_val, jnp.zeros_like(min_val))
        max_val_pos = jnp.maximum(max_val, jnp.zeros_like(max_val))
        if self.symmetric:
            max_val_pos = jnp.maximum(-min_val_neg, max_val_pos)
            scale = max_val_pos / (float(quant_max - quant_min) / 2)
            scale = jnp.maximum(scale, self.eps)
            zero_point = jnp.zeros_like(min_val_neg).astype(jnp.int32)
        else:
            scale = (max_val_pos - min_val_neg) / float(quant_max - quant_min)
            scale = jnp.maximum(scale, self.eps)
            zero_point = quant_min - jnp.round(min_val_neg / scale)
            zero_point = jnp.clip(zero_point, quant_min, quant_max).astype(jnp.int32)
        return scale, zero_point


class MinMaxObserver2(ObserverBase):
    """Calculate minmax of whole calibration dataset (overwrites each call)."""

    def forward(self, x_orig):
        """Records the running minimum and maximum of ``x``."""
        if x_orig.size == 0:
            return x_orig
        # The cast to float32 (min_val dtype) happens per-block inside the kernel,
        # so no extra HBM copy of the input is materialized.
        min_val_cur, max_val_cur = pallas_aminmax(x_orig, self.ch_axis)
        self.min_val = min_val_cur
        self.max_val = max_val_cur
        return min_val_cur, max_val_cur

    __call__ = forward


# --------------------------------------------------------------------------
if __name__ == "__main__":
    key = jax.random.PRNGKey(0)
    k1, k2, k3 = jax.random.split(key, 3)

    # NCHW calibration batch
    x = jax.random.normal(k1, (2, 4, 16, 16), dtype=jnp.float32)
    x_np = np.asarray(x)

    # --- global aminmax (ch_axis = -1) ---
    obs = MinMaxObserver2(bit=8, symmetric=False, ch_axis=-1)
    mn, mx = obs(x)
    jax.block_until_ready((mn, mx))
    assert np.allclose(np.asarray(mn), x_np.min(), rtol=0, atol=1e-6)
    assert np.allclose(np.asarray(mx), x_np.max(), rtol=0, atol=1e-6)

    # --- per-channel aminmax on a middle axis (ch_axis = 1), transpose-free ---
    obs_c = MinMaxObserver2(bit=8, symmetric=True, ch_axis=1)
    mn_c, mx_c = obs_c(x)
    jax.block_until_ready((mn_c, mx_c))
    ref_c = x_np.transpose(1, 0, 2, 3).reshape(4, -1)
    assert np.allclose(np.asarray(mn_c), ref_c.min(axis=1), rtol=0, atol=1e-6)
    assert np.allclose(np.asarray(mx_c), ref_c.max(axis=1), rtol=0, atol=1e-6)

    # --- per-channel aminmax on the last axis (ch_axis = 3) ---
    obs_l = MinMaxObserver2(bit=8, symmetric=False, ch_axis=3)
    mn_l, mx_l = obs_l(x)
    jax.block_until_ready((mn_l, mx_l))
    ref_l = x_np.transpose(3, 0, 1, 2).reshape(16, -1)
    assert np.allclose(np.asarray(mn_l), ref_l.min(axis=1), rtol=0, atol=1e-6)
    assert np.allclose(np.asarray(mx_l), ref_l.max(axis=1), rtol=0, atol=1e-6)

    # --- exercise multi-tile + masked-tail code paths with tiny block budgets ---
    z = jax.random.normal(k2, (3, 8, 1000), dtype=jnp.float32)
    z_np = np.asarray(z)
    mn_z, mx_z = _pallas_aminmax_lane(z, target_block_bytes=8 * 256 * 4)
    jax.block_until_ready((mn_z, mx_z))
    assert np.allclose(np.asarray(mn_z), z_np.min(axis=(0, 2)), rtol=0, atol=1e-6)
    assert np.allclose(np.asarray(mx_z), z_np.max(axis=(0, 2)), rtol=0, atol=1e-6)

    w = jax.random.normal(k3, (1000, 16), dtype=jnp.float32)
    w_np = np.asarray(w)
    mn_w, mx_w = _pallas_aminmax_sublane(w, target_block_bytes=4096)
    jax.block_until_ready((mn_w, mx_w))
    assert np.allclose(np.asarray(mn_w), w_np.min(axis=0), rtol=0, atol=1e-6)
    assert np.allclose(np.asarray(mx_w), w_np.max(axis=0), rtol=0, atol=1e-6)

    # qparams derived from the observed range (plain JAX math on reduced values)
    scale, zp = obs.calculate_qparams(obs.min_val, obs.max_val)
    jax.block_until_ready((scale, zp))

    print("KERNEL_OK")
</pallas_src>

<mosaic_0001>
module attributes {stable_mosaic.version = 11 : i64} {
  func.func @kernel(%arg0: i32, %arg1: i32, %arg2: i32, %arg3: memref<1x8x128xf32, #tpu.memory_space<vmem>>, %arg4: memref<8x1xf32, #tpu.memory_space<vmem>>, %arg5: memref<8x1xf32, #tpu.memory_space<vmem>>, %arg6: memref<8x128xf32, #tpu.memory_space<vmem>>, %arg7: memref<8x128xf32, #tpu.memory_space<vmem>>) attributes {dimension_semantics = [#tpu.dimension_semantics<parallel>, #tpu.dimension_semantics<arbitrary>, #tpu.dimension_semantics<arbitrary>], iteration_bounds = array<i64: 2, 1, 1>, scalar_prefetch = 0 : i64, scratch_operands = 2 : i64, tpu.core_type = #tpu.core_type<tc>, window_params = [{transform_indices = @transform_0, window_bounds = array<i64: 1, 8, 128>}, {transform_indices = @transform_1, window_bounds = array<i64: 8, 1>}, {transform_indices = @transform_2, window_bounds = array<i64: 8, 1>}]} {
    %c0_i32 = arith.constant 0 : i32
    %0 = arith.cmpi eq, %arg1, %c0_i32 : i32
    %c0_i32_0 = arith.constant 0 : i32
    %1 = arith.cmpi eq, %arg2, %c0_i32_0 : i32
    %2 = arith.andi %0, %1 : i1
    %3 = arith.extui %2 : i1 to i32
    %c0_i32_1 = arith.constant 0 : i32
    %4 = arith.cmpi ne, %3, %c0_i32_1 : i32
    scf.if %4 {
      %cst = arith.constant 0x7F800000 : f32
      %18 = vector.broadcast %cst : f32 to vector<8x128xf32>
      %c0_15 = arith.constant 0 : index
      %c0_16 = arith.constant 0 : index
      %19 = vector.load %arg6[%c0_15, %c0_16] : memref<8x128xf32, #tpu.memory_space<vmem>>, vector<8x128xf32>
      tpu.vector_store %arg6[%c0_15, %c0_16], %18 {strides = array<i32>} : memref<8x128xf32, #tpu.memory_space<vmem>>, vector<8x128xf32>,
      %cst_17 = arith.constant 0xFF800000 : f32
      %20 = vector.broadcast %cst_17 : f32 to vector<8x128xf32>
      %c0_18 = arith.constant 0 : index
      %c0_19 = arith.constant 0 : index
      %21 = vector.load %arg7[%c0_18, %c0_19] : memref<8x128xf32, #tpu.memory_space<vmem>>, vector<8x128xf32>
      tpu.vector_store %arg7[%c0_18, %c0_19], %20 {strides = array<i32>} : memref<8x128xf32, #tpu.memory_space<vmem>>, vector<8x128xf32>,
    } else {
    }
    %c0 = arith.constant 0 : index
    %c0_2 = arith.constant 0 : index
    %c0_3 = arith.constant 0 : index
    %5 = vector.load %arg3[%c0, %c0_2, %c0_3] : memref<1x8x128xf32, #tpu.memory_space<vmem>>, vector<1x8x128xf32>
    %6 = vector.shape_cast %5 : vector<1x8x128xf32> to vector<8x128xf32>
    %c0_4 = arith.constant 0 : index
    %c0_5 = arith.constant 0 : index
    %7 = vector.load %arg6[%c0_4, %c0_5] : memref<8x128xf32, #tpu.memory_space<vmem>>, vector<8x128xf32>
    %8 = arith.minimumf %7, %6 : vector<8x128xf32>
    %c0_6 = arith.constant 0 : index
    %c0_7 = arith.constant 0 : index
    %9 = vector.load %arg6[%c0_6, %c0_7] : memref<8x128xf32, #tpu.memory_space<vmem>>, vector<8x128xf32>
    tpu.vector_store %arg6[%c0_6, %c0_7], %8 {strides = array<i32>} : memref<8x128xf32, #tpu.memory_space<vmem>>, vector<8x128xf32>,
    %c0_8 = arith.constant 0 : index
    %c0_9 = arith.constant 0 : index
    %10 = vector.load %arg7[%c0_8, %c0_9] : memref<8x128xf32, #tpu.memory_space<vmem>>, vector<8x128xf32>
    %11 = arith.maximumf %10, %6 : vector<8x128xf32>
    %c0_10 = arith.constant 0 : index
    %c0_11 = arith.constant 0 : index
    %12 = vector.load %arg7[%c0_10, %c0_11] : memref<8x128xf32, #tpu.memory_space<vmem>>, vector<8x128xf32>
    tpu.vector_store %arg7[%c0_10, %c0_11], %11 {strides = array<i32>} : memref<8x128xf32, #tpu.memory_space<vmem>>, vector<8x128xf32>,
    %c0_i32_12 = arith.constant 0 : i32
    %13 = arith.cmpi eq, %arg1, %c0_i32_12 : i32
    %c0_i32_13 = arith.constant 0 : i32
    %14 = arith.cmpi eq, %arg2, %c0_i32_13 : i32
    %15 = arith.andi %13, %14 : i1
    %16 = arith.extui %15 : i1 to i32
    %c0_i32_14 = arith.constant 0 : i32
    %17 = arith.cmpi ne, %16, %c0_i32_14 : i32
    scf.if %17 {
      %c0_15 = arith.constant 0 : index
      %c0_16 = arith.constant 0 : index
      %18 = vector.load %arg6[%c0_15, %c0_16] : memref<8x128xf32, #tpu.memory_space<vmem>>, vector<8x128xf32>
      %cst = arith.constant dense<0x7F800000> : vector<8xf32>
      %19 = vector.multi_reduction <minimumf>, %18, %cst [1] : vector<8x128xf32> to vector<8xf32>
      %20 = vector.shape_cast %19 : vector<8xf32> to vector<8x1xf32>
      %c0_17 = arith.constant 0 : index
      %c0_18 = arith.constant 0 : index
      %21 = vector.load %arg4[%c0_17, %c0_18] : memref<8x1xf32, #tpu.memory_space<vmem>>, vector<8x1xf32>
      tpu.vector_store %arg4[%c0_17, %c0_18], %20 {strides = array<i32>} : memref<8x1xf32, #tpu.memory_space<vmem>>, vector<8x1xf32>,
      %c0_19 = arith.constant 0 : index
      %c0_20 = arith.constant 0 : index
      %22 = vector.load %arg7[%c0_19, %c0_20] : memref<8x128xf32, #tpu.memory_space<vmem>>, vector<8x128xf32>
      %cst_21 = arith.constant dense<0xFF800000> : vector<8xf32>
      %23 = vector.multi_reduction <maximumf>, %22, %cst_21 [1] : vector<8x128xf32> to vector<8xf32>
      %24 = vector.shape_cast %23 : vector<8xf32> to vector<8x1xf32>
      %c0_22 = arith.constant 0 : index
      %c0_23 = arith.constant 0 : index
      %25 = vector.load %arg5[%c0_22, %c0_23] : memref<8x1xf32, #tpu.memory_space<vmem>>, vector<8x1xf32>
      tpu.vector_store %arg5[%c0_22, %c0_23], %24 {strides = array<i32>} : memref<8x1xf32, #tpu.memory_space<vmem>>, vector<8x1xf32>,
    } else {
    }
    return
  }
  func.func @transform_0(%arg0: i32, %arg1: i32, %arg2: i32) -> (i32, i32, i32) {
    %c0_i32 = arith.constant 0 : i32
    return %arg1, %arg0, %arg2 : i32, i32, i32
  }
  func.func @transform_1(%arg0: i32, %arg1: i32, %arg2: i32) -> (i32, i32) {
    %c0_i32 = arith.constant 0 : i32
    %c0_i32_0 = arith.constant 0 : i32
    return %arg0, %c0_i32 : i32, i32
  }
  func.func @transform_2(%arg0: i32, %arg1: i32, %arg2: i32) -> (i32, i32) {
    %c0_i32 = arith.constant 0 : i32
    %c0_i32_0 = arith.constant 0 : i32
    return %arg0, %c0_i32 : i32, i32
  }
}

</mosaic_0001>

<bundles_post_ra>
// kernel: tpu_custom_call.1
= control target key start
LH: loop header
LB: loop body
LE: loop exit
PB: predicated region body
PF: predicated region fallthrough
CT: control target
= control target key end

     0   :  { %8 = vsyncpa [#allocation5], 0  ;;  %s625_s0 = inlined_call_operand.hbm [shape: f32[1,16,128], index: 0, kind: input, shape index: {}]   ;;  %s626_s1 = inlined_call_operand.vmem [shape: f32[16,1], index: 1, kind: output, shape index: {0}]   ;;  %s627_s2 = inlined_call_operand.vmem [shape: f32[16,1], index: 2, kind: output, shape index: {1}]  }
   0x1   :  { %10 = vsyncpa [#allocation5 + $0x1], 0  ;;  %s497_s9 = smov 0   ;;  %s499_s10 = smov 0  }
   0x2   :  { %s501_s11 = smov 0   ;;  %s503_s12 = smov 0  }
   0x3   :  { %s505_s13 = smov 0   ;;  %s507_s14 = smov 0  }
   0x4 LB: > { %s332_s15 = sadd.s32 4294967295, %s479_s14   ;;  %s35_s16 = sadd.s32 1, %s475_s13  ;;  %s479_s14 = sphi %s507_s14, %s16_s14   ;;  %s475_s13 = sphi %s505_s13, %s637_s13   ;;  %s471_s12 = sphi %s503_s12, %s636_s12   ;;  %s467_s11 = sphi %s501_s11, %s635_s11   ;;  %s463_s10 = sphi %s499_s10, %s634_s10   ;;  %s459_s9 = sphi %s497_s9, %s633_s9  }
   0x5   : > { %p37_p0 = scmp.ge.s32.totalorder %s35_s16, 2  ;;  %s46_s17 = sadd.s32 1, %s467_s11 }
   0x6   : > { %p53_p1 = scmp.ne.s32.totalorder %s467_s11, %s463_s10  ;;  %p54_p2 = scmp.eq.s32.totalorder %s479_s14, 0 }
   0x7   : > { %s639_s16 = smov (%p37_p0, %s35_s16), 0  ;;  %p59_p4 = scmp.ne.s32.totalorder %s463_s10, %s459_s9 }
   0x8   : > { %p533_p3 = por %p54_p2, %p53_p1  ;;  %s40_s19 = ssub.s32 %s475_s13, %s639_s16 }
   0x9   : > { %p60_p5 = scmp.eq.s32.totalorder %s332_s15, 0  ;;  %p44_p6 = scmp.eq.s32.totalorder %s40_s19, 0 }
   0xa   : > { %p350_p8 = scmp.lt.s32.totalorder %s479_s14, 2  ;;  %s135_s22 = sand.u32 1, %s467_s11  }
   0xb   : > { %p540_p7 = por %p60_p5, %p59_p4  ;;  %s337_s23 = sshll.u32 %s475_s13, 7 }
   0xc   : > { %s546_s21 = scalar_select %p44_p6, %s467_s11, %s46_s17  }
   0xd   : > { %s336_s24 = sshll.u32 %s135_s22, 3  ;;  %s553_s27 = scalar_lea.hbm %s625_s0, %s337_s23 }
   0xe   : > { %s139_s28 = scalar_lea.vmem [#allocation4], %s336_s24  ;;  %p557_p9 = pnand %p350_p8, %p533_p3 }
   0xf   : > { %s149_s29 = sshll.u32 %s139_s28, 4  ;;  %s136_s3 = scalar_lea.sflag [#allocation5], %s135_s22  ;;  %s561_s29 = int_to_ptr.vmem [resolvable:$true] %s149_s29 }
  0x10   : > { %s399_s4 = scalar_lea.hbm %s553_s27, 128  ;;  %p401_p13 = pneg %p557_p9 }
  0x11   : > { %p400_p12 = scmp.ne.s32.totalorder %s553_s27, %s399_s4  ;;  %s404_s7 = scalar_lea.hbm %s625_s0, 256 }
  0x12   : > { %p405_p2 = scmp.lt.u32.totalorder %s553_s27, %s625_s0  ;;  %p406_p3 = scmp.lt.u32.totalorder %s404_s7, %s399_s4 }
  0x13   : > { %p402_p0 = pnand %p401_p13, %p400_p12  ;;  %p408_p5 = scmp.lt.u32.totalorder %s399_s4, %s553_s27 }
  0x14   : > { %p407_p4 = por %p406_p3, %p405_p2 }
  0x15   : > { %p403_p1 = pneg %p402_p0 }
  0x16   : > { %p409_p6 = por %p408_p5, %p407_p4 }
  0x18   : > { %p410_p8 = pnand %p409_p6, %p403_p1 }
  0x1a   : > { %413 = shalt.err (!%p410_p8)
}
  0x1b   : > { %s414_s15 = scalar_lea.vmem %s561_s29, 128  ;;  %s481_s17 = smov [#allocation4]  }
  0x1c   : > { %p415_p12 = scmp.ne.s32.totalorder %s561_s29, %s414_s15  ;;  %s419_s18 = sshll.u32 %s481_s17, 4  ;;  %s420_s18 = int_to_ptr.vmem [resolvable:$false] %s419_s18 }
  0x1d   : > { %s421_s19 = scalar_lea.vmem %s420_s18, 256  ;;  %p422_p11 = scmp.lt.s32.totalorder %s561_s29, %s420_s18 }
  0x1e   : > { %p417_p0 = pnand %p415_p12, %p401_p13  ;;  %p423_p2 = scmp.lt.s32.totalorder %s421_s19, %s414_s15 }
  0x20   : > { %p418_p10 = pneg %p417_p0  ;;  %p424_p3 = por %p423_p2, %p422_p11 }
  0x22   : > { %p425_p4 = pnand %p424_p3, %p418_p10 }
  0x24   : > { %428 = shalt.err (!%p425_p4)
}
  0x25   : > { %349 = dma.hbm_to_vmem [thread:$0]  (!%p557_p9), %s553_s27, 128, %s561_s29, %s136_s3  }
  0x26   : > { %p631_p1 = scmp.lt.s32.totalorder %s479_s14, 3  ;;  %p632_p5 = scmp.ge.s32.totalorder %s479_s14, 1 }
  0x28   : > { %p155_p13 = pnand %p632_p5, %p631_p1 }
  0x29   : > { %s160_s22 = sand.u32 (!%p155_p13), 1, %s463_s10  }
  0x2a   : > { %158 = sbr.rel (%p155_p13) target bundleno = 198 (0xc6), region = 24  ;;  %s339_s23 = sshll.u32 (!%p155_p13), %s160_s22, 3 }
  0x2b   : > { %s161_s24 = scalar_lea.sflag (!%p155_p13), [#allocation5], %s160_s22  ;;  %s164_s25 = scalar_lea.vmem (!%p155_p13), [#allocation4], %s339_s23 }
  0x31   : > { %454 = dma.done.wait (%p540_p7), %s161_s24, 128  }
  0x32   : > { %456 = vsyncadd (%p540_p7), %s161_s24, 4294967168  ;;  %v204_v0 = vld [vmem:[%s164_s25] sm:$0xff]  ;;  %p188_p9 = scmp.lt.s32.totalorder %s471_s12, 1  ;;  %vm216_vm0 = vcmask 7168  }
  0x33   : > { %214 = vmin.xlane.f32.xlu0 %v204_v0 }
  0x34   : > { %s641_s12 = smov (!%p188_p9, %s471_s12), 1 }
  0x35   : > { %s340_s26 = sshll.u32 %s641_s12, 3 }
  0x36   : > { %s191_s29 = scalar_lea.vmem %s626_s1, %s340_s26  ;;  %s195_s20 = scalar_lea.vmem %s627_s2, %s340_s26 }
  0x37   : > { %219 = vmax.xlane.f32.xlu0 %v204_v0 }
  0xc0   : > { %v215_v1 = vpop.xlane.xlu0 %214 }
  0xc1   : > { %217 = vst.msk [vmem:[%s191_s29] sm:$0xff] %vm216_vm0, %v215_v1 }
  0xc4   : > { %v220_v2 = vpop.xlane.xlu0 %219 }
  0xc5   : > { %221 = vst.msk [vmem:[%s195_s20] sm:$0xff] %vm216_vm0, %v220_v2 }
  0xc6 PF: > { %s16_s14 = sadd.s32 1, %s479_s14   ;;  %s633_s9 = smov %s463_s10 }
  0xc7   : > { %p13_p7 = scmp.ge.s32.totalorder %s16_s14, 4   ;;  %s634_s10 = smov %s467_s11 }
  0xc8   : > { %s635_s11 = smov %s546_s21  ;;  %s636_s12 = smov %s475_s13 }
  0xc9   : > { %s637_s13 = smov %s639_s16  ;;  %15 = sbr.rel (!%p13_p7) target bundleno = 4 (0x4), region = 84 }
  0xd0   :  { %255 = vsyncpa [#allocation5], 1 }
  0xd1   :  { %257 = vsyncpa [#allocation5 + $0x1], 1 }

</bundles_post_ra>
